<compile_context>
chip_gen: v7x
topology: tpu7x:2x2x1
jax: 0.10.0
libtpu: 0.0.40
codegen_flags: <defaults>
</compile_context>

<pallas_src>
import functools

import numpy as np
import jax
import jax.numpy as jnp
from jax import lax
from jax.experimental import pallas as pl
from jax.experimental.pallas import tpu as pltpu


# ------------------------------ pointwise conv kernel --------------------------------
def _outconv_kernel(x_ref, w_ref, b_ref, o_ref, *, use_vpu: bool):
    # x_ref: (1, Cin, TS)   spatial on lanes (lane-dense)
    # w_ref: (Cout, Cin)    full (tiny) weight matrix, resident across the grid
    # b_ref: (Cout, 1)      bias
    # o_ref: (1, Cout, TS)  lane-dense output slab
    x = x_ref[0].astype(jnp.float32)                 # (Cin, TS)
    w = w_ref[...]                                   # (Cout, Cin) f32
    b = b_ref[...]                                   # (Cout, 1)   f32
    if use_vpu:
        # Tiny K: unrolled VPU broadcast-MACs over input channels (no MXU push/pop latency).
        # TODO(synk): stride-0 sublane-broadcast loads of x rows would offload the sublane
        # broadcast from the XLU once HBM is no longer the binding slot.
        cout, cin = w.shape
        acc = jnp.zeros((cout, x.shape[1]), jnp.float32)
        for ci in range(cin):
            acc = acc + w[:, ci:ci + 1] * x[ci:ci + 1, :]
        y = acc + b
    else:
        # One MXU matmul per tile (f32 accumulate); bias add rides the VPU.
        y = jnp.dot(w, x, preferred_element_type=jnp.float32) + b
    o_ref[0] = y.astype(o_ref.dtype)


# --------------------------------- tile selection -------------------------------------
def _round_up(x, m):
    return (x + m - 1) // m * m


def _select_tiling(S, N, cin, cout, device_kind, dtype_bytes):
    """Pick (TS, S_pad, n_tiles) for the flattened spatial axis (TS multiple of 128)."""
    S128 = _round_up(S, 128)
    # Double-buffered VMEM bytes per spatial lane (x tile + y tile).
    bytes_per_lane = max(1, 2 * (cin + cout) * dtype_bytes)
    is_v7 = "v7" in device_kind
    budget = (20 << 20) if is_v7 else (28 << 20)      # leave scoped-VMEM headroom
    cap = max(128, (budget // bytes_per_lane) // 128 * 128)
    cap = min(cap, 256 * 1024)                        # well past the per-step-overhead knee
    n_tiles = pl.cdiv(S128, cap)
    # Keep at least 2 grid programs total so megacore (v7x) has work for both cores.
    if N * n_tiles < 2 and S128 >= 256:
        n_tiles = 2
    TS = _round_up(pl.cdiv(S128, n_tiles), 128)
    n_tiles = pl.cdiv(S128, TS)
    S_pad = n_tiles * TS
    return TS, S_pad, n_tiles


# ------------------------------------ wrapper ------------------------------------------
def outconv_forward(x_ncdhw, w, b):
    """nn.Conv3d(in_ch, out_ch, kernel_size=1) forward.  x: (N, Cin, D, H, W)."""
    N, Cin, D, H, W = x_ncdhw.shape
    Cout = w.shape[0]
    S = D * H * W
    out_dtype = x_ncdhw.dtype
    itemsize = jnp.dtype(out_dtype).itemsize

    try:
        device_kind = jax.devices()[0].device_kind.lower()
    except Exception:
        device_kind = "unknown"

    x2 = x_ncdhw.reshape(N, Cin, S)                   # contiguous no-op reshape
    w2 = w.reshape(Cout, Cin).astype(jnp.float32)
    b2 = b.reshape(Cout, 1).astype(jnp.float32)

    TS, S_pad, n_tiles = _select_tiling(S, N, Cin, Cout, device_kind, itemsize)
    if S_pad != S:
        # Pad the flattened spatial axis so every tile is full-width (unmasked stores).
        x2 = jnp.pad(x2, ((0, 0), (0, 0), (0, S_pad - S)))

    # VPU MAC path on v5e/v6e (HBM-bound, tiny K); MXU dot on v7x or for larger Cin.
    use_vpu = (Cin <= 8) and ("v7" not in device_kind)

    # Deeper pipelining only when per-step HBM time is tiny and the grid is long.
    deep = {}
    if TS <= 8192 and N * n_tiles >= 8:
        deep = dict(pipeline_mode=pl.Buffered(3))

    # Explicit scoped-VMEM limit: buffered x+y tiles plus headroom, clamped well under
    # v7x's 64 MiB physical and above v5e's 16 MiB scoped default.
    footprint = 3 * (Cin + Cout) * itemsize * TS
    vmem_limit = int(min(max(footprint + (4 << 20), 16 << 20), 40 << 20))

    kern = functools.partial(_outconv_kernel, use_vpu=use_vpu)
    y = pl.pallas_call(
        kern,
        out_shape=jax.ShapeDtypeStruct((N, Cout, S_pad), out_dtype),
        grid=(N, n_tiles),
        in_specs=[
            pl.BlockSpec((1, Cin, TS), lambda n, s: (n, 0, s), **deep),
            pl.BlockSpec((Cout, Cin), lambda n, s: (0, 0)),
            pl.BlockSpec((Cout, 1), lambda n, s: (0, 0)),
        ],
        out_specs=pl.BlockSpec((1, Cout, TS), lambda n, s: (n, 0, s), **deep),
        compiler_params=pltpu.CompilerParams(
            dimension_semantics=("parallel", "parallel"),
            vmem_limit_bytes=vmem_limit),
    )(x2, w2, b2)

    if S_pad != S:
        y = y[:, :, :S]
    return y.reshape(N, Cout, D, H, W)


# ----------------------------------- parameters --------------------------------------
def init_outconv_params(key, in_ch, out_ch):
    kw, kb = jax.random.split(key)
    return {
        "w": 0.1 * jax.random.normal(kw, (out_ch, in_ch, 1, 1, 1), jnp.float32),
        "b": 0.05 * jax.random.normal(kb, (out_ch,), jnp.float32),
    }


# ------------------------------- pure-JAX reference -----------------------------------
def reference_forward(x, p):
    dn = ("NCDHW", "OIDHW", "NCDHW")
    y = lax.conv_general_dilated(x, p["w"], (1, 1, 1),
                                 [(0, 0), (0, 0), (0, 0)], dimension_numbers=dn)
    return y + p["b"].reshape(1, -1, 1, 1, 1)


if __name__ == "__main__":
    key = jax.random.PRNGKey(0)
    kx, kp = jax.random.split(key)

    in_ch, out_ch = 4, 8
    N, D, H, W = 2, 8, 16, 16
    x = jax.random.normal(kx, (N, in_ch, D, H, W), jnp.float32)
    params = init_outconv_params(kp, in_ch, out_ch)

    out = jax.jit(lambda a: outconv_forward(a, params["w"], params["b"]))(x)
    out = jax.block_until_ready(out)

    ref = reference_forward(x, params)
    np.testing.assert_allclose(np.asarray(out), np.asarray(ref), rtol=1e-4, atol=1e-4)
    assert out.shape == (N, out_ch, D, H, W)
    print("KERNEL_OK")
</pallas_src>

<mosaic_0001>
module attributes {stable_mosaic.version = 11 : i64} {
  func.func @_outconv_kernel(%arg0: i32, %arg1: i32, %arg2: memref<1x4x2048xf32, #tpu.memory_space<vmem>>, %arg3: memref<8x4xf32, #tpu.memory_space<vmem>>, %arg4: memref<8x1xf32, #tpu.memory_space<vmem>>, %arg5: memref<1x8x2048xf32, #tpu.memory_space<vmem>>) attributes {dimension_semantics = [#tpu.dimension_semantics<parallel>, #tpu.dimension_semantics<parallel>], iteration_bounds = array<i64: 2, 1>, scalar_prefetch = 0 : i64, scratch_operands = 0 : i64, tpu.core_type = #tpu.core_type<tc>, window_params = [{transform_indices = @transform_0, window_bounds = array<i64: 1, 4, 2048>}, {pipeline_mode = #tpu.pipeline_mode<synchronous>, transform_indices = @transform_1, window_bounds = array<i64: 8, 4>}, {pipeline_mode = #tpu.pipeline_mode<synchronous>, transform_indices = @transform_2, window_bounds = array<i64: 8, 1>}, {transform_indices = @transform_3, window_bounds = array<i64: 1, 8, 2048>}]} {
    %c0 = arith.constant 0 : index
    %c0_0 = arith.constant 0 : index
    %c0_1 = arith.constant 0 : index
    %0 = vector.load %arg2[%c0, %c0_0, %c0_1] : memref<1x4x2048xf32, #tpu.memory_space<vmem>>, vector<1x4x2048xf32>
    %1 = vector.shape_cast %0 : vector<1x4x2048xf32> to vector<4x2048xf32>
    %c0_2 = arith.constant 0 : index
    %c0_3 = arith.constant 0 : index
    %2 = vector.load %arg3[%c0_2, %c0_3] : memref<8x4xf32, #tpu.memory_space<vmem>>, vector<8x4xf32>
    %c0_4 = arith.constant 0 : index
    %c0_5 = arith.constant 0 : index
    %3 = vector.load %arg4[%c0_4, %c0_5] : memref<8x1xf32, #tpu.memory_space<vmem>>, vector<8x1xf32>
    %cst = arith.constant 0.000000e+00 : f32
    %4 = vector.broadcast %cst : f32 to vector<8x2048xf32>
    %5 = vector.extract_strided_slice %2 {offsets = [0, 0], sizes = [8, 1], strides = [1, 1]} : vector<8x4xf32> to vector<8x1xf32>
    %6 = vector.extract_strided_slice %1 {offsets = [0, 0], sizes = [1, 2048], strides = [1, 1]} : vector<4x2048xf32> to vector<1x2048xf32>
    %7 = vector.broadcast %5 : vector<8x1xf32> to vector<8x2048xf32>
    %8 = vector.broadcast %6 : vector<1x2048xf32> to vector<8x2048xf32>
    %9 = arith.mulf %7, %8 : vector<8x2048xf32>
    %10 = arith.addf %4, %9 : vector<8x2048xf32>
    %11 = vector.extract_strided_slice %2 {offsets = [0, 1], sizes = [8, 1], strides = [1, 1]} : vector<8x4xf32> to vector<8x1xf32>
    %12 = vector.extract_strided_slice %1 {offsets = [1, 0], sizes = [1, 2048], strides = [1, 1]} : vector<4x2048xf32> to vector<1x2048xf32>
    %13 = vector.broadcast %11 : vector<8x1xf32> to vector<8x2048xf32>
    %14 = vector.broadcast %12 : vector<1x2048xf32> to vector<8x2048xf32>
    %15 = arith.mulf %13, %14 : vector<8x2048xf32>
    %16 = arith.addf %10, %15 : vector<8x2048xf32>
    %17 = vector.extract_strided_slice %2 {offsets = [0, 2], sizes = [8, 1], strides = [1, 1]} : vector<8x4xf32> to vector<8x1xf32>
    %18 = vector.extract_strided_slice %1 {offsets = [2, 0], sizes = [1, 2048], strides = [1, 1]} : vector<4x2048xf32> to vector<1x2048xf32>
    %19 = vector.broadcast %17 : vector<8x1xf32> to vector<8x2048xf32>
    %20 = vector.broadcast %18 : vector<1x2048xf32> to vector<8x2048xf32>
    %21 = arith.mulf %19, %20 : vector<8x2048xf32>
    %22 = arith.addf %16, %21 : vector<8x2048xf32>
    %23 = vector.extract_strided_slice %2 {offsets = [0, 3], sizes = [8, 1], strides = [1, 1]} : vector<8x4xf32> to vector<8x1xf32>
    %24 = vector.extract_strided_slice %1 {offsets = [3, 0], sizes = [1, 2048], strides = [1, 1]} : vector<4x2048xf32> to vector<1x2048xf32>
    %25 = vector.broadcast %23 : vector<8x1xf32> to vector<8x2048xf32>
    %26 = vector.broadcast %24 : vector<1x2048xf32> to vector<8x2048xf32>
    %27 = arith.mulf %25, %26 : vector<8x2048xf32>
    %28 = arith.addf %22, %27 : vector<8x2048xf32>
    %29 = vector.broadcast %3 : vector<8x1xf32> to vector<8x2048xf32>
    %30 = arith.addf %28, %29 : vector<8x2048xf32>
    %c0_6 = arith.constant 0 : index
    %c0_7 = arith.constant 0 : index
    %c0_8 = arith.constant 0 : index
    %31 = vector.load %arg5[%c0_6, %c0_7, %c0_8] : memref<1x8x2048xf32, #tpu.memory_space<vmem>>, vector<1x8x2048xf32>
    %32 = vector.shape_cast %31 : vector<1x8x2048xf32> to vector<8x2048xf32>
    %33 = vector.shape_cast %30 : vector<8x2048xf32> to vector<1x8x2048xf32>
    tpu.vector_store %arg5[%c0_6, %c0_7, %c0_8], %33 {strides = array<i32>} : memref<1x8x2048xf32, #tpu.memory_space<vmem>>, vector<1x8x2048xf32>,
    return
  }
  func.func @transform_0(%arg0: i32, %arg1: i32) -> (i32, i32, i32) {
    %c0_i32 = arith.constant 0 : i32
    %c0_i32_0 = arith.constant 0 : i32
    return %arg0, %c0_i32, %arg1 : i32, i32, i32
  }
  func.func @transform_1(%arg0: i32, %arg1: i32) -> (i32, i32) {
    %c0_i32 = arith.constant 0 : i32
    %c0_i32_0 = arith.constant 0 : i32
    %c0_i32_1 = arith.constant 0 : i32
    return %c0_i32, %c0_i32_0 : i32, i32
  }
  func.func @transform_2(%arg0: i32, %arg1: i32) -> (i32, i32) {
    %c0_i32 = arith.constant 0 : i32
    %c0_i32_0 = arith.constant 0 : i32
    %c0_i32_1 = arith.constant 0 : i32
    return %c0_i32, %c0_i32_0 : i32, i32
  }
  func.func @transform_3(%arg0: i32, %arg1: i32) -> (i32, i32, i32) {
    %c0_i32 = arith.constant 0 : i32
    %c0_i32_0 = arith.constant 0 : i32
    return %arg0, %c0_i32, %arg1 : i32, i32, i32
  }
}

</mosaic_0001>

<bundles_post_ra>
// kernel: _lambda_.1
= control target key start
LH: loop header
LB: loop body
LE: loop exit
PB: predicated region body
PF: predicated region fallthrough
CT: control target
= control target key end

     0   :  { %s1168_s12 = smov 0   ;;  %s1170_s13 = smov 0   ;;  %s1619_s0 = inlined_call_operand.vmem [shape: f32[2,4,2048], index: 0, kind: input, shape index: {}]   ;;  %s1620_s1 = inlined_call_operand.vmem [shape: f32[8,4], index: 1, kind: input, shape index: {}]   ;;  %s1621_s2 = inlined_call_operand.vmem [shape: f32[8,1], index: 2, kind: input, shape index: {}]   ;;  %s1622_s3 = inlined_call_operand.vmem [shape: f32[2,8,2048], index: 3, kind: output, shape index: {}]  }
   0x1   :  { %s1172_s14 = smov 0  }
   0x2 LB: > { %s25_s15 = sadd.s32 1, %s1138_s13  ;;  %p1077_p0 = scmp.ge.s32.totalorder %s1142_s14, 1  ;;  %s1142_s14 = sphi %s1172_s14, %s13_s14   ;;  %s1138_s13 = sphi %s1170_s13, %s1668_s13   ;;  %s1134_s12 = sphi %s1168_s12, %s1667_s12  }
   0x3   : > { %p27_p1 = scmp.ge.s32.totalorder %s25_s15, 2  ;;  %p158_p2 = scmp.lt.s32.totalorder %s1142_s14, 3 }
   0x5   : > { %s1670_s15 = smov (%p27_p1, %s25_s15), 0  ;;  %p159_p3 = pnand %p1077_p0, %p158_p2 }
   0x7   : > { %162 = sbr.rel (%p159_p3) target bundleno = 183 (0xb7), region = 32 }
   0xe   : > { %v218_v0 = vld [vmem:[%s1620_s1] sm:$0xff]  ;;  %v1144_v1 = vmov 0   ;;  %v1145_v2 = vmov 2   ;;  %v1146_v3 = vmov 1   ;;  %v1147_v4 = vmov 3   ;;  %p191_p4 = scmp.lt.s32.totalorder %s1134_s12, 1 }
   0xf   : > { %1114 = vset.pattern.permute.xlu0 %v1144_v1  ;;  %1116 = vset.pattern.permute.xlu1 %v1145_v2  ;;  %v219_v5 = vld [vmem:[%s1621_s2] sm:$0xff]  ;;  %v233_v6 = vlaneseq }
  0x10   : > { %222 = vperm.xlu0 %1114, %v218_v0   ;;  %590 = vperm.xlu1 %1116, %v218_v0   ;;  %s1672_s12 = smov (!%p191_p4, %s1134_s12), 1 }
  0x11   : > { %s1084_s20 = sshll.u32 %s1672_s12, 6  ;;  %v1195_v7 = vshrl.u32 %v233_v6, 7  ;;  %s1085_s24 = sshll.u32 %s1672_s12, 7 }
  0x12   : > { %s198_s23 = scalar_lea.vmem %s1619_s0, %s1084_s20  ;;  %s1592_s27 = scalar_lea.vmem %s1622_s3, %s1085_s24 }
  0x13   : > { %v235_v8 = vsub.s32 0, %v1195_v7  ;;  %v239_v9 = vsub.s32 4, %v1195_v7  ;;  %v1202_v10 = vld [vmem:[%s198_s23] sm:$0xff]  ;;  %v1204_v11 = vld [vmem:[%s198_s23 + $0x8] sm:$0xff]  ;;  %v1206_v12 = vld [vmem:[%s198_s23 + $0x10] sm:$0xff]  ;;  %v1209_v13 = vsub.s32 1, %v1195_v7 }
  0x14   : > { %1115 = vset.pattern.permute.xlu0 %v1146_v3  ;;  %1117 = vset.pattern.permute.xlu1 %v1147_v4  ;;  %v1212_v14 = vsub.s32 5, %v1195_v7  ;;  %v1214_v15 = vld [vmem:[%s198_s23 + $0x18] sm:$0xff]  ;;  %v1216_v16 = vld [vmem:[%s198_s23 + $0x20] sm:$0xff]  ;;  %v1219_v17 = vsub.s32 2, %v1195_v7  ;;  %v1222_v18 = vsub.s32 3, %v1195_v7  ;;  %v1224_v19 = vld [vmem:[%s198_s23 + $0x28] sm:$0xff] }
  0x15   : > { %410 = vperm.xlu0 %1115, %v218_v0   ;;  %770 = vperm.xlu1 %1117, %v218_v0   ;;  %v1226_v20 = vld [vmem:[%s198_s23 + $0x30] sm:$0xff]  ;;  %v236_v21 = vrot.slane %v1202_v10, %v235_v8  ;;  %v1230_v22 = vsub.s32 6, %v1195_v7  ;;  %v1232_v23 = vld [vmem:[%s198_s23 + $0x38] sm:$0xff]  ;;  %v240_v24 = vrot.slane %v1202_v10, %v239_v9  ;;  %v244_v25 = vrot.slane %v1204_v11, %v235_v8 }
  0x16   : > { %v248_v26 = vrot.slane %v1204_v11, %v239_v9  ;;  %v252_v27 = vrot.slane %v1206_v12, %v235_v8  ;;  %v256_v28 = vrot.slane %v1206_v12, %v239_v9  ;;  %v260_v29 = vrot.slane %v1214_v15, %v235_v8 }
  0x17   : > { %v264_v30 = vrot.slane %v1214_v15, %v239_v9  ;;  %v268_v31 = vrot.slane %v1216_v16, %v235_v8  ;;  %v272_v32 = vrot.slane %v1216_v16, %v239_v9  ;;  %v276_v33 = vrot.slane %v1224_v19, %v235_v8 }
  0x18   : > { %v280_v34 = vrot.slane %v1224_v19, %v239_v9  ;;  %v284_v35 = vrot.slane %v1226_v20, %v235_v8  ;;  %v288_v36 = vrot.slane %v1226_v20, %v239_v9  ;;  %v292_v37 = vrot.slane %v1232_v23, %v235_v8 }
  0x19   : > { %1118 = vset.pattern.permute.xlu1 %v1144_v1  ;;  %1119 = vset.pattern.permute.xlu0 %v1144_v1  ;;  %v296_v38 = vrot.slane %v1232_v23, %v239_v9  ;;  %v1249_v39 = vrot.slane %v236_v21, %v235_v8  ;;  %v1251_v40 = vrot.slane %v240_v24, %v235_v8 }
  0x1a   : > { %951 = vperm.xlu1 %1118, %v219_v5   ;;  %v1253_v41 = vrot.slane %v244_v25, %v235_v8  ;;  %v1255_v42 = vrot.slane %v248_v26, %v235_v8  ;;  %v1257_v43 = vrot.slane %v252_v27, %v235_v8  ;;  %v1259_v44 = vrot.slane %v256_v28, %v235_v8 }
  0x1b   : > { %v1261_v45 = vrot.slane %v260_v29, %v235_v8  ;;  %v1263_v46 = vrot.slane %v264_v30, %v235_v8  ;;  %v1265_v47 = vrot.slane %v268_v31, %v235_v8  ;;  %v1267_v48 = vrot.slane %v272_v32, %v235_v8 }
  0x1c   : > { %v1269_v49 = vrot.slane %v276_v33, %v235_v8  ;;  %v1271_v50 = vrot.slane %v280_v34, %v235_v8  ;;  %v1273_v51 = vrot.slane %v284_v35, %v235_v8  ;;  %v1275_v52 = vrot.slane %v288_v36, %v235_v8 }
  0x1d   : > { %v1277_v53 = vrot.slane %v292_v37, %v235_v8  ;;  %v1279_v54 = vrot.slane %v296_v38, %v235_v8  ;;  %v416_v55 = vrot.slane %v1202_v10, %v1209_v13  ;;  %v420_v56 = vrot.slane %v1202_v10, %v1212_v14 }
  0x1e   : > { %v424_v57 = vrot.slane %v1204_v11, %v1209_v13  ;;  %v428_v58 = vrot.slane %v1204_v11, %v1212_v14  ;;  %v432_v59 = vrot.slane %v1206_v12, %v1209_v13  ;;  %v436_v60 = vrot.slane %v1206_v12, %v1212_v14 }
  0x1f   : > { %v440_v61 = vrot.slane %v1214_v15, %v1209_v13  ;;  %v444_v62 = vrot.slane %v1214_v15, %v1212_v14  ;;  %v448_v63 = vrot.slane %v1216_v16, %v1209_v13  ;;  %v452_v0 = vrot.slane %v1216_v16, %v1212_v14 }
  0x20   : > { %v456_v1 = vrot.slane %v1224_v19, %v1209_v13  ;;  %v460_v2 = vrot.slane %v1224_v19, %v1212_v14  ;;  %v464_v3 = vrot.slane %v1226_v20, %v1209_v13  ;;  %v468_v4 = vrot.slane %v1226_v20, %v1212_v14 }
  0x21   : > { %v472_v5 = vrot.slane %v1232_v23, %v1209_v13  ;;  %v476_v6 = vrot.slane %v1232_v23, %v1212_v14  ;;  %v1314_v8 = vrot.slane %v416_v55, %v1209_v13  ;;  %v1317_v9 = vrot.slane %v420_v56, %v1209_v13 }
  0x22   : > { %v1320_v21 = vrot.slane %v424_v57, %v1209_v13  ;;  %v1323_v24 = vrot.slane %v428_v58, %v1209_v13  ;;  %v1326_v25 = vrot.slane %v432_v59, %v1209_v13  ;;  %v1329_v26 = vrot.slane %v436_v60, %v1209_v13 }
  0x23   : > { %v1332_v14 = vrot.slane %v440_v61, %v1209_v13  ;;  %v1335_v27 = vrot.slane %v444_v62, %v1209_v13  ;;  %v1338_v28 = vrot.slane %v448_v63, %v1209_v13  ;;  %v1341_v29 = vrot.slane %v452_v0, %v1209_v13 }
  0x24   : > { %v1344_v30 = vrot.slane %v456_v1, %v1209_v13  ;;  %v1347_v31 = vrot.slane %v460_v2, %v1209_v13  ;;  %v1350_v32 = vrot.slane %v464_v3, %v1209_v13  ;;  %v1353_v33 = vrot.slane %v468_v4, %v1209_v13 }
  0x25   : > { %v1356_v34 = vrot.slane %v472_v5, %v1209_v13  ;;  %v1359_v35 = vrot.slane %v476_v6, %v1209_v13  ;;  %v1362_v36 = vsub.s32 7, %v1195_v7  ;;  %v596_v37 = vrot.slane %v1202_v10, %v1219_v17 }
  0x26   : > { %v600_v38 = vrot.slane %v1202_v10, %v1230_v22  ;;  %v604_v55 = vrot.slane %v1204_v11, %v1219_v17  ;;  %v608_v56 = vrot.slane %v1204_v11, %v1230_v22  ;;  %v612_v57 = vrot.slane %v1206_v12, %v1219_v17 }
  0x27   : > { %1623 = vst [vmem:[#allocation2_spill] sm:$0xff] %v1356_v34  ;;  %1624 = vst [vmem:[#allocation3_spill] sm:$0xff] %v1359_v35  ;;  %v616_v13 = vrot.slane %v1206_v12, %v1230_v22  ;;  %v620_v7 = vrot.slane %v1214_v15, %v1219_v17  ;;  %v624_v58 = vrot.slane %v1214_v15, %v1230_v22 }
  0x28   : > { %v628_v59 = vrot.slane %v1216_v16, %v1219_v17  ;;  %v632_v60 = vrot.slane %v1216_v16, %v1230_v22  ;;  %v636_v61 = vrot.slane %v1224_v19, %v1219_v17  ;;  %v640_v62 = vrot.slane %v1224_v19, %v1230_v22 }
  0x29   : > { %v644_v63 = vrot.slane %v1226_v20, %v1219_v17  ;;  %v648_v0 = vrot.slane %v1226_v20, %v1230_v22  ;;  %v652_v1 = vrot.slane %v1232_v23, %v1219_v17  ;;  %v656_v2 = vrot.slane %v1232_v23, %v1230_v22 }
  0x2a   : > { %v1397_v3 = vrot.slane %v596_v37, %v1219_v17  ;;  %v1400_v4 = vrot.slane %v600_v38, %v1219_v17  ;;  %v1403_v5 = vrot.slane %v604_v55, %v1219_v17  ;;  %v1406_v6 = vrot.slane %v608_v56, %v1219_v17 }
  0x2b   : > { %v1409_v35 = vrot.slane %v612_v57, %v1219_v17  ;;  %v1412_v34 = vrot.slane %v616_v13, %v1219_v17  ;;  %v1415_v22 = vrot.slane %v620_v7, %v1219_v17  ;;  %v1418_v37 = vrot.slane %v624_v58, %v1219_v17 }
  0x2c   : > { %v1421_v38 = vrot.slane %v628_v59, %v1219_v17  ;;  %v1424_v55 = vrot.slane %v632_v60, %v1219_v17  ;;  %v1427_v56 = vrot.slane %v636_v61, %v1219_v17  ;;  %v1430_v57 = vrot.slane %v640_v62, %v1219_v17 }
  0x2d   : > { %v1433_v13 = vrot.slane %v644_v63, %v1219_v17  ;;  %v1436_v7 = vrot.slane %v648_v0, %v1219_v17  ;;  %v1439_v58 = vrot.slane %v652_v1, %v1219_v17  ;;  %v1442_v59 = vrot.slane %v656_v2, %v1219_v17 }
  0x2e   : > { %1625 = vst [vmem:[#allocation4_spill] sm:$0xff] %v1424_v55  ;;  %1626 = vst [vmem:[#allocation5_spill] sm:$0xff] %v1427_v56  ;;  %v776_v60 = vrot.slane %v1202_v10, %v1222_v18  ;;  %v780_v61 = vrot.slane %v1202_v10, %v1362_v36  ;;  %v784_v62 = vrot.slane %v1204_v11, %v1222_v18 }
  0x2f   : > { %1627 = vst [vmem:[#allocation6_spill] sm:$0xff] %v1430_v57  ;;  %1628 = vst [vmem:[#allocation7_spill] sm:$0xff] %v1433_v13  ;;  %v788_v63 = vrot.slane %v1204_v11, %v1362_v36  ;;  %v792_v0 = vrot.slane %v1206_v12, %v1222_v18  ;;  %v796_v1 = vrot.slane %v1206_v12, %v1362_v36 }
  0x30   : > { %1629 = vst [vmem:[#allocation8_spill] sm:$0xff] %v1436_v7  ;;  %1630 = vst [vmem:[#allocation9_spill] sm:$0xff] %v1439_v58  ;;  %v800_v17 = vrot.slane %v1214_v15, %v1222_v18  ;;  %v804_v2 = vrot.slane %v1214_v15, %v1362_v36  ;;  %v808_v10 = vrot.slane %v1216_v16, %v1222_v18 }
  0x31   : > { %1631 = vst [vmem:[#allocation10_spill] sm:$0xff] %v1442_v59  ;;  %v812_v59 = vrot.slane %v1216_v16, %v1362_v36  ;;  %v816_v11 = vrot.slane %v1224_v19, %v1222_v18  ;;  %v820_v58 = vrot.slane %v1224_v19, %v1362_v36  ;;  %v824_v12 = vrot.slane %v1226_v20, %v1222_v18 }
  0x32   : > { %v828_v7 = vrot.slane %v1226_v20, %v1362_v36  ;;  %v832_v15 = vrot.slane %v1232_v23, %v1222_v18  ;;  %v836_v13 = vrot.slane %v1232_v23, %v1362_v36  ;;  %v1477_v16 = vrot.slane %v776_v60, %v1222_v18 }
  0x33   : > { %v1480_v57 = vrot.slane %v780_v61, %v1222_v18  ;;  %v1483_v19 = vrot.slane %v784_v62, %v1222_v18  ;;  %v1486_v56 = vrot.slane %v788_v63, %v1222_v18  ;;  %v1489_v20 = vrot.slane %v792_v0, %v1222_v18 }
  0x34   : > { %v1492_v55 = vrot.slane %v796_v1, %v1222_v18  ;;  %v1495_v23 = vrot.slane %v800_v17, %v1222_v18  ;;  %v1498_v36 = vrot.slane %v804_v2, %v1222_v18  ;;  %v1501_v60 = vrot.slane %v808_v10, %v1222_v18 }
  0x35   : > { %1632 = vst [vmem:[#allocation11_spill] sm:$0xff] %v1486_v56  ;;  %1633 = vst [vmem:[#allocation12_spill] sm:$0xff] %v1489_v20  ;;  %v1504_v61 = vrot.slane %v812_v59, %v1222_v18  ;;  %v1507_v62 = vrot.slane %v816_v11, %v1222_v18  ;;  %v1510_v63 = vrot.slane %v820_v58, %v1222_v18 }
  0x36   : > { %1634 = vst [vmem:[#allocation13_spill] sm:$0xff] %v1492_v55  ;;  %1635 = vst [vmem:[#allocation14_spill] sm:$0xff] %v1495_v23  ;;  %v1513_v1 = vrot.slane %v824_v12, %v1222_v18  ;;  %v1516_v17 = vrot.slane %v828_v7, %v1222_v18  ;;  %v1519_v2 = vrot.slane %v832_v15, %v1222_v18 }
  0x37   : > { %1636 = vst [vmem:[#allocation15_spill] sm:$0xff] %v1498_v36  ;;  %1637 = vst [vmem:[#allocation16_spill] sm:$0xff] %v1501_v60  ;;  %v1522_v10 = vrot.slane %v836_v13, %v1222_v18 }
  0x38   : > { %1638 = vst [vmem:[#allocation17_spill] sm:$0xff] %v1504_v61  ;;  %1639 = vst [vmem:[#allocation18_spill] sm:$0xff] %v1507_v62 }
  0x39   : > { %1640 = vst [vmem:[#allocation19_spill] sm:$0xff] %v1510_v63  ;;  %1641 = vst [vmem:[#allocation20_spill] sm:$0xff] %v1513_v1 }
  0x3a   : > { %1642 = vst [vmem:[#allocation21_spill] sm:$0xff] %v1516_v17  ;;  %1643 = vst [vmem:[#allocation22_spill] sm:$0xff] %v1519_v2  ;;  %v1646_v2 = vld [vmem:[#allocation3_spill] sm:$0xff] }
  0x3b   : > { %1644 = vst [vmem:[#allocation23_spill] sm:$0xff] %v1522_v10 }
  0x8f   : > { %v223_v0 = vpop.permute.xlu0 %222  ;;  %v591_v62 = vpop.permute.xlu1 %590 }
  0x90   : > { %v377_v59 = vmul.f32 %v1249_v39, %v223_v0  ;;  %v378_v11 = vmul.f32 %v1251_v40, %v223_v0  ;;  %v379_v58 = vmul.f32 %v1253_v41, %v223_v0  ;;  %v380_v63 = vmul.f32 %v1255_v42, %v223_v0 }
  0x91   : > { %v381_v12 = vmul.f32 %v1257_v43, %v223_v0  ;;  %v382_v7 = vmul.f32 %v1259_v44, %v223_v0  ;;  %v383_v17 = vmul.f32 %v1261_v45, %v223_v0  ;;  %v384_v15 = vmul.f32 %v1263_v46, %v223_v0 }
  0x92   : > { %v385_v18 = vmul.f32 %v1265_v47, %v223_v0  ;;  %v386_v13 = vmul.f32 %v1267_v48, %v223_v0  ;;  %v387_v39 = vmul.f32 %v1269_v49, %v223_v0  ;;  %v388_v40 = vmul.f32 %v1271_v50, %v223_v0 }
  0x93   : > { %v389_v41 = vmul.f32 %v1273_v51, %v223_v0  ;;  %v390_v42 = vmul.f32 %v1275_v52, %v223_v0  ;;  %v391_v43 = vmul.f32 %v1277_v53, %v223_v0  ;;  %v392_v44 = vmul.f32 %v1279_v54, %v223_v0  ;;  %v1645_v0 = vld [vmem:[#allocation2_spill] sm:$0xff] }
  0x94   : > { %v411_v10 = vpop.permute.xlu0 %410  ;;  %v737_v45 = vmul.f32 %v1397_v3, %v591_v62  ;;  %v738_v46 = vmul.f32 %v1400_v4, %v591_v62  ;;  %v739_v47 = vmul.f32 %v1403_v5, %v591_v62  ;;  %v740_v48 = vmul.f32 %v1406_v6, %v591_v62 }
  0x95   : > { %v557_v49 = vmul.f32 %v1314_v8, %v411_v10  ;;  %v558_v50 = vmul.f32 %v1317_v9, %v411_v10  ;;  %v559_v51 = vmul.f32 %v1320_v21, %v411_v10  ;;  %v560_v52 = vmul.f32 %v1323_v24, %v411_v10 }
  0x96   : > { %v561_v53 = vmul.f32 %v1326_v25, %v411_v10  ;;  %v562_v54 = vmul.f32 %v1329_v26, %v411_v10  ;;  %v563_v3 = vmul.f32 %v1332_v14, %v411_v10  ;;  %v564_v4 = vmul.f32 %v1335_v27, %v411_v10 }
  0x97   : > { %v565_v5 = vmul.f32 %v1338_v28, %v411_v10  ;;  %v566_v6 = vmul.f32 %v1341_v29, %v411_v10  ;;  %v567_v8 = vmul.f32 %v1344_v30, %v411_v10  ;;  %v568_v9 = vmul.f32 %v1347_v31, %v411_v10 }
  0x98   : > { %v569_v21 = vmul.f32 %v1350_v32, %v411_v10  ;;  %v570_v24 = vmul.f32 %v1353_v33, %v411_v10  ;;  %v571_v25 = vmul.f32 %v1645_v0, %v411_v10  ;;  %v572_v26 = vmul.f32 %v1646_v2, %v411_v10 }
  0x99   : > { %v573_v1 = vadd.f32 %v557_v49, %v377_v59  ;;  %v574_v14 = vadd.f32 %v558_v50, %v378_v11  ;;  %v575_v61 = vadd.f32 %v559_v51, %v379_v58  ;;  %v576_v27 = vadd.f32 %v560_v52, %v380_v63  ;;  %v1648_v58 = vld [vmem:[#allocation5_spill] sm:$0xff]  ;;  %v771_v49 = vpop.permute.xlu1 %770 }
  0x9a   : > { %v577_v60 = vadd.f32 %v561_v53, %v381_v12  ;;  %v578_v28 = vadd.f32 %v562_v54, %v382_v7  ;;  %v579_v36 = vadd.f32 %v563_v3, %v383_v17  ;;  %v580_v29 = vadd.f32 %v564_v4, %v384_v15  ;;  %v1647_v17 = vld [vmem:[#allocation4_spill] sm:$0xff]  ;;  %v1649_v7 = vld [vmem:[#allocation6_spill] sm:$0xff] }
  0x9b   : > { %v581_v23 = vadd.f32 %v565_v5, %v385_v18  ;;  %v582_v30 = vadd.f32 %v566_v6, %v386_v13  ;;  %v583_v55 = vadd.f32 %v567_v8, %v387_v39  ;;  %v584_v31 = vadd.f32 %v568_v9, %v388_v40  ;;  %v1650_v18 = vld [vmem:[#allocation7_spill] sm:$0xff]  ;;  %v1651_v39 = vld [vmem:[#allocation8_spill] sm:$0xff] }
  0x9c   : > { %v585_v20 = vadd.f32 %v569_v21, %v389_v41  ;;  %v586_v32 = vadd.f32 %v570_v24, %v390_v42  ;;  %v587_v56 = vadd.f32 %v571_v25, %v391_v43  ;;  %v588_v33 = vadd.f32 %v572_v26, %v392_v44  ;;  %v1652_v41 = vld [vmem:[#allocation9_spill] sm:$0xff]  ;;  %v1653_v42 = vld [vmem:[#allocation10_spill] sm:$0xff]  ;;  %v1659_v24 = vld [vmem:[#allocation16_spill] sm:$0xff] }
  0x9d   : > { %v741_v0 = vmul.f32 %v1409_v35, %v591_v62  ;;  %v742_v2 = vmul.f32 %v1412_v34, %v591_v62  ;;  %v743_v10 = vmul.f32 %v1415_v22, %v591_v62  ;;  %v744_v63 = vmul.f32 %v1418_v37, %v591_v62  ;;  %v1660_v25 = vld [vmem:[#allocation17_spill] sm:$0xff] }
  0x9e   : > { %v745_v59 = vmul.f32 %v1421_v38, %v591_v62  ;;  %v746_v11 = vmul.f32 %v1647_v17, %v591_v62  ;;  %v747_v12 = vmul.f32 %v1648_v58, %v591_v62  ;;  %v748_v15 = vmul.f32 %v1649_v7, %v591_v62  ;;  %v952_v17 = vpop.permute.xlu1 %951 }
  0x9f   : > { %v749_v13 = vmul.f32 %v1650_v18, %v591_v62  ;;  %v750_v40 = vmul.f32 %v1651_v39, %v591_v62  ;;  %v751_v35 = vmul.f32 %v1652_v41, %v591_v62  ;;  %v752_v34 = vmul.f32 %v1653_v42, %v591_v62 }
  0xa0   : > { %v753_v43 = vadd.f32 %v737_v45, %v573_v1  ;;  %v754_v22 = vadd.f32 %v738_v46, %v574_v14  ;;  %v755_v44 = vadd.f32 %v739_v47, %v575_v61  ;;  %v756_v37 = vadd.f32 %v740_v48, %v576_v27  ;;  %v1654_v1 = vld [vmem:[#allocation11_spill] sm:$0xff]  ;;  %v1655_v45 = vld [vmem:[#allocation12_spill] sm:$0xff]  ;;  %v1656_v46 = vld [vmem:[#allocation13_spill] sm:$0xff] }
  0xa1   : > { %v757_v38 = vadd.f32 %v741_v0, %v577_v60  ;;  %v758_v50 = vadd.f32 %v742_v2, %v578_v28  ;;  %v759_v51 = vadd.f32 %v743_v10, %v579_v36  ;;  %v760_v52 = vadd.f32 %v744_v63, %v580_v29  ;;  %v1657_v47 = vld [vmem:[#allocation14_spill] sm:$0xff]  ;;  %v1658_v48 = vld [vmem:[#allocation15_spill] sm:$0xff]  ;;  %v1663_v28 = vld [vmem:[#allocation20_spill] sm:$0xff] }
  0xa2   : > { %v761_v53 = vadd.f32 %v745_v59, %v581_v23  ;;  %v762_v54 = vadd.f32 %v746_v11, %v582_v30  ;;  %v763_v3 = vadd.f32 %v747_v12, %v583_v55  ;;  %v764_v4 = vadd.f32 %v748_v15, %v584_v31  ;;  %v1662_v27 = vld [vmem:[#allocation19_spill] sm:$0xff]  ;;  %v1664_v29 = vld [vmem:[#allocation21_spill] sm:$0xff]  ;;  %v1665_v31 = vld [vmem:[#allocation22_spill] sm:$0xff] }
  0xa3   : > { %v765_v5 = vadd.f32 %v749_v13, %v585_v20  ;;  %v766_v6 = vadd.f32 %v750_v40, %v586_v32  ;;  %v767_v8 = vadd.f32 %v751_v35, %v587_v56  ;;  %v768_v9 = vadd.f32 %v752_v34, %v588_v33  ;;  %v1666_v33 = vld [vmem:[#allocation23_spill] sm:$0xff] }
  0xa4   : > { %v917_v21 = vmul.f32 %v1477_v16, %v771_v49  ;;  %v918_v62 = vmul.f32 %v1480_v57, %v771_v49  ;;  %v919_v61 = vmul.f32 %v1483_v19, %v771_v49  ;;  %v920_v60 = vmul.f32 %v1654_v1, %v771_v49  ;;  %v1661_v16 = vld [vmem:[#allocation18_spill] sm:$0xff] }
  0xa5   : > { %v921_v36 = vmul.f32 %v1655_v45, %v771_v49  ;;  %v922_v23 = vmul.f32 %v1656_v46, %v771_v49  ;;  %v923_v55 = vmul.f32 %v1657_v47, %v771_v49  ;;  %v924_v20 = vmul.f32 %v1658_v48, %v771_v49 }
  0xa6   : > { %v925_v56 = vmul.f32 %v1659_v24, %v771_v49  ;;  %v926_v26 = vmul.f32 %v1660_v25, %v771_v49  ;;  %v927_v14 = vmul.f32 %v1661_v16, %v771_v49  ;;  %v928_v57 = vmul.f32 %v1662_v27, %v771_v49 }
  0xa7   : > { %v929_v19 = vmul.f32 %v1663_v28, %v771_v49  ;;  %v930_v30 = vmul.f32 %v1664_v29, %v771_v49  ;;  %v931_v32 = vmul.f32 %v1665_v31, %v771_v49  ;;  %v932_v0 = vmul.f32 %v1666_v33, %v771_v49 }
  0xa8   : > { %v933_v2 = vadd.f32 %v917_v21, %v753_v43  ;;  %v934_v10 = vadd.f32 %v918_v62, %v754_v22  ;;  %v935_v63 = vadd.f32 %v919_v61, %v755_v44  ;;  %v936_v59 = vadd.f32 %v920_v60, %v756_v37 }
  0xa9   : > { %v937_v11 = vadd.f32 %v921_v36, %v757_v38  ;;  %v938_v58 = vadd.f32 %v922_v23, %v758_v50  ;;  %v939_v12 = vadd.f32 %v923_v55, %v759_v51  ;;  %v940_v7 = vadd.f32 %v924_v20, %v760_v52 }
  0xaa   : > { %v941_v15 = vadd.f32 %v925_v56, %v761_v53  ;;  %v942_v18 = vadd.f32 %v926_v26, %v762_v54  ;;  %v943_v13 = vadd.f32 %v927_v14, %v763_v3  ;;  %v944_v39 = vadd.f32 %v928_v57, %v764_v4 }
  0xab   : > { %v945_v40 = vadd.f32 %v929_v19, %v765_v5  ;;  %v946_v41 = vadd.f32 %v930_v30, %v766_v6  ;;  %v947_v35 = vadd.f32 %v931_v32, %v767_v8  ;;  %v948_v42 = vadd.f32 %v932_v0, %v768_v9 }
  0xac   : > { %v954_v34 = vadd.f32 %v952_v17, %v933_v2  ;;  %v955_v43 = vadd.f32 %v952_v17, %v934_v10  ;;  %v956_v22 = vadd.f32 %v952_v17, %v935_v63  ;;  %v957_v44 = vadd.f32 %v952_v17, %v936_v59 }
  0xad   : > { %v958_v37 = vadd.f32 %v952_v17, %v937_v11  ;;  %v959_v49 = vadd.f32 %v952_v17, %v938_v58  ;;  %v960_v38 = vadd.f32 %v952_v17, %v939_v12  ;;  %v961_v50 = vadd.f32 %v952_v17, %v940_v7 }
  0xae   : > { %v962_v51 = vadd.f32 %v952_v17, %v941_v15  ;;  %v963_v52 = vadd.f32 %v952_v17, %v942_v18  ;;  %v964_v53 = vadd.f32 %v952_v17, %v943_v13  ;;  %v965_v54 = vadd.f32 %v952_v17, %v944_v39  ;;  %970 = vst [vmem:[%s1592_s27] sm:$0xff] %v954_v34 }
  0xaf   : > { %971 = vst [vmem:[%s1592_s27 + $0x8] sm:$0xff] %v955_v43  ;;  %972 = vst [vmem:[%s1592_s27 + $0x10] sm:$0xff] %v956_v22  ;;  %v966_v3 = vadd.f32 %v952_v17, %v945_v40  ;;  %v967_v4 = vadd.f32 %v952_v17, %v946_v41  ;;  %v968_v5 = vadd.f32 %v952_v17, %v947_v35 }
  0xb0   : > { %973 = vst [vmem:[%s1592_s27 + $0x18] sm:$0xff] %v957_v44  ;;  %v969_v6 = vadd.f32 %v952_v17, %v948_v42  ;;  %974 = vst [vmem:[%s1592_s27 + $0x20] sm:$0xff] %v958_v37 }
  0xb1   : > { %975 = vst [vmem:[%s1592_s27 + $0x28] sm:$0xff] %v959_v49  ;;  %976 = vst [vmem:[%s1592_s27 + $0x30] sm:$0xff] %v960_v38 }
  0xb2   : > { %977 = vst [vmem:[%s1592_s27 + $0x38] sm:$0xff] %v961_v50  ;;  %978 = vst [vmem:[%s1592_s27 + $0x40] sm:$0xff] %v962_v51 }
  0xb3   : > { %979 = vst [vmem:[%s1592_s27 + $0x48] sm:$0xff] %v963_v52  ;;  %980 = vst [vmem:[%s1592_s27 + $0x50] sm:$0xff] %v964_v53 }
  0xb4   : > { %981 = vst [vmem:[%s1592_s27 + $0x58] sm:$0xff] %v965_v54  ;;  %982 = vst [vmem:[%s1592_s27 + $0x60] sm:$0xff] %v966_v3 }
  0xb5   : > { %983 = vst [vmem:[%s1592_s27 + $0x68] sm:$0xff] %v967_v4  ;;  %984 = vst [vmem:[%s1592_s27 + $0x70] sm:$0xff] %v968_v5 }
  0xb6   : > { %985 = vst [vmem:[%s1592_s27 + $0x78] sm:$0xff] %v969_v6 }
  0xb7 PF: > { %s13_s14 = sadd.s32 1, %s1142_s14   ;;  %s1667_s12 = smov %s1138_s13 }
  0xb8   : > { %p10_p5 = scmp.ge.s32.totalorder %s13_s14, 4   ;;  %s1668_s13 = smov %s1670_s15 }
  0xba   :  { %12 = sbr.rel (!%p10_p5) target bundleno = 2 (0x2), region = 62 }

</bundles_post_ra>
